<compile_context>
chip_gen: v6e
topology: v6e:2x2x1
jax: 0.10.0
libtpu: 0.0.40
codegen_flags: <defaults>
</compile_context>

<pallas_src>
import functools
import math

import numpy as np
import jax
import jax.numpy as jnp
from jax import lax
from jax.experimental import pallas as pl
from jax.experimental.pallas import tpu as pltpu


# ----------------------------------------------------------------------------
# Hardware / layout helpers
# ----------------------------------------------------------------------------
def _sublane_multiple(dtype) -> int:
    """Minimum second-minor tile multiple for this dtype (8 f32, 16 bf16, ...)."""
    return max(8, 32 // jnp.dtype(dtype).itemsize)


def _vmem_capacity_bytes() -> int:
    """Physical VMEM of the local TPU; conservative default if unqueryable."""
    try:
        info = pltpu.get_tpu_info()
        for attr in ("vmem_capacity_bytes", "vmem_bytes", "vmem_size_bytes"):
            v = getattr(info, attr, None)
            if isinstance(v, (int, float)) and v > 0:
                return int(v)
    except Exception:
        pass
    return 64 << 20  # v7x per-TC VMEM; safe lower bound for all generations


@functools.lru_cache(maxsize=None)
def _roll_convention(dtype_name: str):
    """Probe pltpu.roll's sublane-rotation direction on a multi-vreg tile.

    Returns True  -> matches np.roll (out[i] = in[i - shift]),
            False -> opposite convention,
            None  -> inconclusive (kernel falls back to a concatenate shift)."""
    dtype = jnp.dtype(dtype_name)
    rows = 3 * _sublane_multiple(dtype)          # multi-vreg sublane extent

    def probe(x_ref, o_ref):
        o_ref[...] = pltpu.roll(x_ref[...], shift=1, axis=0)

    x_f32 = (jnp.arange(rows, dtype=jnp.float32)[:, None] * 128.0
             + jnp.arange(128, dtype=jnp.float32)[None, :])
    x = x_f32.astype(dtype)
    try:
        out = pl.pallas_call(
            probe, out_shape=jax.ShapeDtypeStruct((rows, 128), dtype))(x)
    except Exception:
        return None
    xn = np.asarray(jax.device_get(x), dtype=np.float32)
    on = np.asarray(jax.device_get(out), dtype=np.float32)
    if np.array_equal(on, np.roll(xn, 1, axis=0)):
        return True
    if np.array_equal(on, np.roll(xn, -1, axis=0)):
        return False
    return None


def _shift_rows(x2d, direction, np_roll):
    """y[i] = x2d[(i + direction) % L] along the sublane (row) axis."""
    L = x2d.shape[0]
    if np_roll is None:
        # Fallback: explicit concatenate.  Relayout cost is hidden under the
        # output DMA (this kernel is store-bound).
        if direction == -1:
            return jnp.concatenate([x2d[L - 1:L], x2d[:L - 1]], axis=0)
        return jnp.concatenate([x2d[1:], x2d[0:1]], axis=0)
    if direction == -1:                  # y[i] = x[i - 1]
        shift = 1 if np_roll else L - 1
    else:                                # y[i] = x[i + 1]
        shift = L - 1 if np_roll else 1
    return pltpu.roll(x2d, shift=shift, axis=0)


# ----------------------------------------------------------------------------
# Kernels
# ----------------------------------------------------------------------------
def _kernel_full(x_ref, w_ref, o_ref, *, np_roll):
    """Batch-blocked step: x_ref (TB, L, C), w_ref (3, C, Dp), o_ref (TB, L, Dp).

    The whole circular extent L is inside the tile, so the in-tile roll IS the
    circular shift: no halo operands, no boundary fixups."""
    TB = x_ref.shape[0]
    f32 = jnp.float32
    w0, w1, w2 = w_ref[0], w_ref[1], w_ref[2]          # VMEM-resident weights

    def body(b, carry):
        xb = x_ref[b]                                   # (L, C), storage dtype
        xm1 = _shift_rows(xb, -1, np_roll)              # x[(t-1) % L]
        xp1 = _shift_rows(xb, +1, np_roll)              # x[(t+1) % L]
        acc = jnp.dot(xm1, w0, preferred_element_type=f32)
        acc = acc + jnp.dot(xb, w1, preferred_element_type=f32)
        acc = acc + jnp.dot(xp1, w2, preferred_element_type=f32)
        o_ref[b] = acc.astype(o_ref.dtype)
        return carry

    if TB <= 8:
        for b in range(TB):                             # tiny, statically unrolled
            body(b, 0)
    else:
        lax.fori_loop(0, TB, body, 0)


def _kernel_ltiled(xc_ref, xph_ref, xnh_ref, w_ref, o_ref, *, np_roll):
    """L-tiled step (very long L): xc_ref (1, TL, C); halo blocks (1, HB, C) whose
    last / first row is this tile's circular predecessor / successor row."""
    TL = xc_ref.shape[1]
    f32 = jnp.float32
    xc = xc_ref[0]                                      # (TL, C)
    hb = xph_ref.shape[1]
    prev_row = xph_ref[0, hb - 1:hb, :]                 # (1, C) = x[(start-1) % L]
    next_row = xnh_ref[0, 0:1, :]                       # (1, C) = x[end % L]

    xm1 = _shift_rows(xc, -1, np_roll)                  # wrong only at row 0
    xp1 = _shift_rows(xc, +1, np_roll)                  # wrong only at row TL-1
    w0, w1, w2 = w_ref[0], w_ref[1], w_ref[2]
    acc = jnp.dot(xm1, w0, preferred_element_type=f32)
    acc = acc + jnp.dot(xc, w1, preferred_element_type=f32)
    acc = acc + jnp.dot(xp1, w2, preferred_element_type=f32)
    o_ref[0] = acc.astype(o_ref.dtype)

    # Rank-1 boundary fixups: swap the wrapped in-tile row for the halo row.
    # Tiny (1,C)x(C,Dp) dots + single-row stores; no full-tile passes.
    d0 = prev_row.astype(f32) - xc[TL - 1:TL, :].astype(f32)
    dN = next_row.astype(f32) - xc[0:1, :].astype(f32)
    row0 = acc[0:1, :] + jnp.dot(d0, w0.astype(f32), preferred_element_type=f32)
    rowN = acc[TL - 1:TL, :] + jnp.dot(dN, w2.astype(f32), preferred_element_type=f32)
    o_ref[0, 0:1, :] = row0.astype(o_ref.dtype)
    o_ref[0, TL - 1:TL, :] = rowN.astype(o_ref.dtype)


# ----------------------------------------------------------------------------
# Wrapper
# ----------------------------------------------------------------------------
def prepare_weight(weight, dtype=jnp.float32):
    """PyTorch Conv1d weight (d_model, c_in, 3) -> (3, c_in, d_model).

    Call ONCE at parameter-load time.  Pass dtype=jnp.bfloat16 when x is stored
    bf16 (native MXU path on v6e/v7x, halved weight/operand footprint)."""
    return jnp.transpose(weight, (2, 1, 0)).astype(dtype)


def _pick_tiles(B, L, C, Dp, x_bytes, out_bytes, budget):
    """Choose (mode, TB, TL).  'full': grid over batch blocks of TB batches, whole
    L per tile (no halos).  'ltile': grid (B, L//TL) with halo operands."""
    per_batch = L * (Dp * out_bytes + C * x_bytes)
    if per_batch <= budget:
        tb = min(B, max(1, budget // per_batch), 32)
        while B % tb:
            tb -= 1
        return "full", tb, L
    sub = max(8, 32 // x_bytes)
    if L % sub != 0:
        return "full", 1, L          # cannot L-tile; single full-L tile per step
    per_row = Dp * out_bytes + C * x_bytes
    cap = max(sub, ((budget // per_row) // sub) * sub)
    tl, t = sub, sub
    while t <= min(cap, L):
        if L % t == 0:
            tl = t
        t += sub
    if tl >= L:
        return "full", 1, L
    return "ltile", 1, tl


def token_embedding(x, w3, *, out_dtype=None, pad_d_model=None, max_tile_bytes=None):
    """Pallas TPU forward of TokenEmbedding (circular Conv1d, k=3, no bias).

    x  : (B, L, c_in)   f32 or bf16 storage (bf16 halves x-side HBM traffic).
    w3 : (3, c_in, d_model) from prepare_weight() (done once at load time).
    out_dtype : defaults to x.dtype.  The kernel is HBM-STORE bound, so
        out_dtype=jnp.bfloat16 is the recommended production setting (~2x).
    pad_d_model : None='auto' -> pad d_model to a multiple of 128 (lane-dense,
        unmasked output stores) when the padding overhead is small; the pad is
        stripped outside the kernel.  Production d_model=512 needs no padding.
    Returns (B, L, d_model); same values as the PyTorch module's forward().
    """
    B, L, C = x.shape
    assert w3.shape[0] == 3 and w3.shape[1] == C, w3.shape
    D = w3.shape[2]
    out_dtype = x.dtype if out_dtype is None else jnp.dtype(out_dtype)
    if w3.dtype != x.dtype:
        # Prefer prepare_weight(weight, dtype=x.dtype) at load time to avoid this.
        w3 = w3.astype(x.dtype)

    # Lane-dense output stores: optionally pad d_model up to a multiple of 128.
    if pad_d_model is None:
        pad_d_model = (D % 128 != 0) and (D >= 128)
    Dp = D if (not pad_d_model or D % 128 == 0) else ((D + 127) // 128) * 128
    if Dp != D:
        w3 = jnp.pad(w3, ((0, 0), (0, 0), (0, Dp - D)))

    x_bytes = jnp.dtype(x.dtype).itemsize
    out_bytes = jnp.dtype(out_dtype).itemsize
    w_bytes = jnp.dtype(w3.dtype).itemsize
    vmem_cap = _vmem_capacity_bytes()
    # Per-step tile budget: big tiles amortize the ~0.35us/step overhead and keep
    # the output DMA in its high-efficiency regime.  Smaller cap when VMEM is
    # 64 MiB per core (v7x) or unknown; larger on v5e/v6e (128 MiB).
    budget = (8 << 20) if vmem_cap >= (96 << 20) else (4 << 20)
    if max_tile_bytes is not None:
        budget = min(budget, int(max_tile_bytes))

    np_roll = _roll_convention(str(jnp.dtype(x.dtype)))
    mode, TB, TL = _pick_tiles(B, L, C, Dp, x_bytes, out_bytes, budget)

    if mode == "full":
        # Common production path: one grid step carries TB batches, whole L.
        grid = (B // TB,)
        in_specs = [
            pl.BlockSpec((TB, L, C), lambda g: (g, 0, 0)),
            pl.BlockSpec((3, C, Dp), lambda g: (0, 0, 0)),     # resident weights
        ]
        out_specs = pl.BlockSpec((TB, L, Dp), lambda g: (g, 0, 0))
        kernel = functools.partial(_kernel_full, np_roll=np_roll)
        operands = (x, w3)
        dims = ("parallel",)
        tile_bytes = TB * L * (C * x_bytes + Dp * out_bytes)
        halo_bytes = 0
    else:
        # Very long L: tile L, fetch one tiny halo row-block per side.
        n_l = L // TL
        HB = _sublane_multiple(x.dtype)
        bpt = TL // HB                                   # halo blocks per L-tile
        prev_map = lambda b, l: (b, ((l + n_l - 1) % n_l) * bpt + (bpt - 1), 0)
        next_map = lambda b, l: (b, ((l + 1) % n_l) * bpt, 0)
        grid = (B, n_l)
        in_specs = [
            pl.BlockSpec((1, TL, C), lambda b, l: (b, l, 0)),
            pl.BlockSpec((1, HB, C), prev_map),
            pl.BlockSpec((1, HB, C), next_map),
            pl.BlockSpec((3, C, Dp), lambda b, l: (0, 0, 0)),
        ]
        out_specs = pl.BlockSpec((1, TL, Dp), lambda b, l: (b, l, 0))
        kernel = functools.partial(_kernel_ltiled, np_roll=np_roll)
        operands = (x, x, x, w3)
        dims = ("parallel", "parallel")
        tile_bytes = TL * (C * x_bytes + Dp * out_bytes)
        halo_bytes = 2 * HB * C * x_bytes

    # vmem limit from the actual footprint: double-buffered tiles + resident weight.
    need = 2 * (tile_bytes + halo_bytes) + 2 * (3 * C * Dp * w_bytes) + (4 << 20)
    vmem_limit = int(min(max(need, 16 << 20), max(need, int(vmem_cap * 0.9))))

    out = pl.pallas_call(
        kernel,
        out_shape=jax.ShapeDtypeStruct((B, L, Dp), out_dtype),
        grid_spec=pltpu.PrefetchScalarGridSpec(
            num_scalar_prefetch=0,
            grid=grid,
            in_specs=in_specs,
            out_specs=out_specs,
        ),
        compiler_params=pltpu.CompilerParams(
            dimension_semantics=dims,
            vmem_limit_bytes=vmem_limit,
        ),
    )(*operands)
    return out if Dp == D else out[..., :D]


# ----------------------------------------------------------------------------
# Pure-JAX reference (f32)
# ----------------------------------------------------------------------------
def token_embedding_ref(x, weight):
    """Circular conv1d (k=3, no bias) via rolled einsums; weight in PyTorch layout."""
    w = jnp.transpose(weight, (2, 1, 0)).astype(jnp.float32)   # (3, C, D)
    xf = x.astype(jnp.float32)
    xm1 = jnp.roll(xf, shift=1, axis=1)    # x[(t-1) % L]
    xp1 = jnp.roll(xf, shift=-1, axis=1)   # x[(t+1) % L]
    return (jnp.einsum("blc,cd->bld", xm1, w[0])
            + jnp.einsum("blc,cd->bld", xf, w[1])
            + jnp.einsum("blc,cd->bld", xp1, w[2]))


# ----------------------------------------------------------------------------
# Self-test
# ----------------------------------------------------------------------------
if __name__ == "__main__":
    key = jax.random.PRNGKey(0)
    ks = jax.random.split(key, 3)

    def make_inputs(k, B, L, c_in, d_model):
        kx, kw = jax.random.split(k)
        x = jax.random.normal(kx, (B, L, c_in), dtype=jnp.float32)
        # Deterministic stand-in for kaiming_normal_(fan_in, leaky_relu):
        std = math.sqrt(2.0 / (1.0 + 0.01 ** 2)) / math.sqrt(3 * c_in)
        w = std * jax.random.normal(kw, (d_model, c_in, 3), dtype=jnp.float32)
        return x, w

    # --- T1: batch-blocked full-L path (B=2, L=8, c_in=4, d_model=32), f32 ----
    x, weight = make_inputs(ks[0], B=2, L=8, c_in=4, d_model=32)
    w3 = prepare_weight(weight)                       # once, at parameter load
    out = jax.block_until_ready(token_embedding(x, w3, out_dtype=jnp.float32))
    ref = token_embedding_ref(x, weight)
    assert out.shape == ref.shape, (out.shape, ref.shape)
    assert jnp.allclose(out, ref, atol=1e-5, rtol=1e-5), "T1 full-path f32 mismatch"

    # --- T2: L-tiled path with circular halos + rank-1 row fixups (f32) -------
    x2, weight2 = make_inputs(ks[1], B=2, L=32, c_in=4, d_model=32)
    w3_2 = prepare_weight(weight2)
    out2 = jax.block_until_ready(
        token_embedding(x2, w3_2, out_dtype=jnp.float32, max_tile_bytes=2048))
    ref2 = token_embedding_ref(x2, weight2)
    assert jnp.allclose(out2, ref2, atol=1e-5, rtol=1e-5), "T2 L-tiled f32 mismatch"

    # --- T3: bf16 storage + bf16 output (recommended production setting) ------
    out3 = jax.block_until_ready(
        token_embedding(x.astype(jnp.bfloat16),
                        prepare_weight(weight, dtype=jnp.bfloat16)))
    assert out3.dtype == jnp.bfloat16
    assert jnp.allclose(out3.astype(jnp.float32), ref, atol=5e-2, rtol=5e-2), "T3"

    # --- T4: bf16 L-tiled path (bf16 halos/roll, f32 boundary fixups) ---------
    x4, weight4 = make_inputs(ks[2], B=2, L=64, c_in=4, d_model=32)
    out4 = jax.block_until_ready(
        token_embedding(x4.astype(jnp.bfloat16),
                        prepare_weight(weight4, dtype=jnp.bfloat16),
                        max_tile_bytes=2048))
    ref4 = token_embedding_ref(x4, weight4)
    assert jnp.allclose(out4.astype(jnp.float32), ref4, atol=5e-2, rtol=5e-2), "T4"

    # --- T5: lane-dense padded-output path (d_model -> 128, stripped outside) -
    out5 = jax.block_until_ready(
        token_embedding(x, w3, out_dtype=jnp.float32, pad_d_model=True))
    assert out5.shape == ref.shape
    assert jnp.allclose(out5, ref, atol=1e-5, rtol=1e-5), "T5 padded-D mismatch"

    print("KERNEL_OK")
</pallas_src>

<mosaic_0001>
module attributes {stable_mosaic.version = 11 : i64} {
  func.func @probe(%arg0: memref<24x128xf32, #tpu.memory_space<vmem>>, %arg1: memref<24x128xf32, #tpu.memory_space<vmem>>) attributes {dimension_semantics = [], scalar_prefetch = 0 : i64, scratch_operands = 0 : i64, tpu.core_type = #tpu.core_type<tc>} {
    %c0 = arith.constant 0 : index
    %c0_0 = arith.constant 0 : index
    %0 = vector.load %arg0[%c0, %c0_0] : memref<24x128xf32, #tpu.memory_space<vmem>>, vector<24x128xf32>
    %c1_i32 = arith.constant 1 : i32
    %1 = tpu.dynamic_rotate %0 by %c1_i32 dim 0 : vector<24x128xf32>, i32 -> vector<24x128xf32>
    %c0_1 = arith.constant 0 : index
    %c0_2 = arith.constant 0 : index
    %2 = vector.load %arg1[%c0_1, %c0_2] : memref<24x128xf32, #tpu.memory_space<vmem>>, vector<24x128xf32>
    tpu.vector_store %arg1[%c0_1, %c0_2], %1 {strides = array<i32>} : memref<24x128xf32, #tpu.memory_space<vmem>>, vector<24x128xf32>,
    return
  }
}

module attributes {stable_mosaic.version = 11 : i64} {
  func.func @_kernel_full(%arg0: i32, %arg1: memref<2x8x4xf32, #tpu.memory_space<vmem>>, %arg2: memref<3x4x32xf32, #tpu.memory_space<vmem>>, %arg3: memref<2x8x32xf32, #tpu.memory_space<vmem>>) attributes {dimension_semantics = [#tpu.dimension_semantics<parallel>], iteration_bounds = array<i64: 1>, scalar_prefetch = 0 : i64, scratch_operands = 0 : i64, tpu.core_type = #tpu.core_type<tc>, window_params = [{transform_indices = @transform_0, window_bounds = array<i64: 2, 8, 4>}, {pipeline_mode = #tpu.pipeline_mode<synchronous>, transform_indices = @transform_1, window_bounds = array<i64: 3, 4, 32>}, {transform_indices = @transform_2, window_bounds = array<i64: 2, 8, 32>}]} {
    %c0 = arith.constant 0 : index
    %c0_0 = arith.constant 0 : index
    %c0_1 = arith.constant 0 : index
    %0 = vector.load %arg2[%c0, %c0_0, %c0_1] : memref<3x4x32xf32, #tpu.memory_space<vmem>>, vector<1x4x32xf32>
    %1 = vector.shape_cast %0 : vector<1x4x32xf32> to vector<4x32xf32>
    %c1 = arith.constant 1 : index
    %c0_2 = arith.constant 0 : index
    %c0_3 = arith.constant 0 : index
    %2 = vector.load %arg2[%c1, %c0_2, %c0_3] : memref<3x4x32xf32, #tpu.memory_space<vmem>>, vector<1x4x32xf32>
    %3 = vector.shape_cast %2 : vector<1x4x32xf32> to vector<4x32xf32>
    %c2 = arith.constant 2 : index
    %c0_4 = arith.constant 0 : index
    %c0_5 = arith.constant 0 : index
    %4 = vector.load %arg2[%c2, %c0_4, %c0_5] : memref<3x4x32xf32, #tpu.memory_space<vmem>>, vector<1x4x32xf32>
    %5 = vector.shape_cast %4 : vector<1x4x32xf32> to vector<4x32xf32>
    %c0_6 = arith.constant 0 : index
    %c0_7 = arith.constant 0 : index
    %c0_8 = arith.constant 0 : index
    %6 = vector.load %arg1[%c0_6, %c0_7, %c0_8] : memref<2x8x4xf32, #tpu.memory_space<vmem>>, vector<1x8x4xf32>
    %7 = vector.shape_cast %6 : vector<1x8x4xf32> to vector<8x4xf32>
    %8 = vector.extract_strided_slice %7 {offsets = [7, 0], sizes = [1, 4], strides = [1, 1]} : vector<8x4xf32> to vector<1x4xf32>
    %9 = vector.extract_strided_slice %7 {offsets = [0, 0], sizes = [7, 4], strides = [1, 1]} : vector<8x4xf32> to vector<7x4xf32>
    %10 = tpu.concatenate %8, %9 in 0 : vector<1x4xf32>, vector<7x4xf32> -> vector<8x4xf32>
    %11 = vector.extract_strided_slice %7 {offsets = [1, 0], sizes = [7, 4], strides = [1, 1]} : vector<8x4xf32> to vector<7x4xf32>
    %12 = vector.extract_strided_slice %7 {offsets = [0, 0], sizes = [1, 4], strides = [1, 1]} : vector<8x4xf32> to vector<1x4xf32>
    %13 = tpu.concatenate %11, %12 in 0 : vector<7x4xf32>, vector<1x4xf32> -> vector<8x4xf32>
    %cst = arith.constant dense<0.000000e+00> : vector<8x32xf32>
    %14 = tpu.matmul %10, %1, %cst {dimension_numbers = #tpu.dot_dimension_numbers<[1], [0], [0], [1], [0, 0, 1, 1], [], []>} : vector<8x4xf32>, vector<4x32xf32>, vector<8x32xf32> -> vector<8x32xf32>
    %cst_9 = arith.constant dense<0.000000e+00> : vector<8x32xf32>
    %15 = tpu.matmul %7, %3, %cst_9 {dimension_numbers = #tpu.dot_dimension_numbers<[1], [0], [0], [1], [0, 0, 1, 1], [], []>} : vector<8x4xf32>, vector<4x32xf32>, vector<8x32xf32> -> vector<8x32xf32>
    %16 = arith.addf %14, %15 : vector<8x32xf32>
    %cst_10 = arith.constant dense<0.000000e+00> : vector<8x32xf32>
    %17 = tpu.matmul %13, %5, %cst_10 {dimension_numbers = #tpu.dot_dimension_numbers<[1], [0], [0], [1], [0, 0, 1, 1], [], []>} : vector<8x4xf32>, vector<4x32xf32>, vector<8x32xf32> -> vector<8x32xf32>
    %18 = arith.addf %16, %17 : vector<8x32xf32>
    %c0_11 = arith.constant 0 : index
    %c0_12 = arith.constant 0 : index
    %c0_13 = arith.constant 0 : index
    %19 = vector.load %arg3[%c0_11, %c0_12, %c0_13] : memref<2x8x32xf32, #tpu.memory_space<vmem>>, vector<1x8x32xf32>
    %20 = vector.shape_cast %19 : vector<1x8x32xf32> to vector<8x32xf32>
    %21 = vector.shape_cast %18 : vector<8x32xf32> to vector<1x8x32xf32>
    tpu.vector_store %arg3[%c0_11, %c0_12, %c0_13], %21 {strides = array<i32>} : memref<2x8x32xf32, #tpu.memory_space<vmem>>, vector<1x8x32xf32>,
    %c1_14 = arith.constant 1 : index
    %c0_15 = arith.constant 0 : index
    %c0_16 = arith.constant 0 : index
    %22 = vector.load %arg1[%c1_14, %c0_15, %c0_16] : memref<2x8x4xf32, #tpu.memory_space<vmem>>, vector<1x8x4xf32>
    %23 = vector.shape_cast %22 : vector<1x8x4xf32> to vector<8x4xf32>
    %24 = vector.extract_strided_slice %23 {offsets = [7, 0], sizes = [1, 4], strides = [1, 1]} : vector<8x4xf32> to vector<1x4xf32>
    %25 = vector.extract_strided_slice %23 {offsets = [0, 0], sizes = [7, 4], strides = [1, 1]} : vector<8x4xf32> to vector<7x4xf32>
    %26 = tpu.concatenate %24, %25 in 0 : vector<1x4xf32>, vector<7x4xf32> -> vector<8x4xf32>
    %27 = vector.extract_strided_slice %23 {offsets = [1, 0], sizes = [7, 4], strides = [1, 1]} : vector<8x4xf32> to vector<7x4xf32>
    %28 = vector.extract_strided_slice %23 {offsets = [0, 0], sizes = [1, 4], strides = [1, 1]} : vector<8x4xf32> to vector<1x4xf32>
    %29 = tpu.concatenate %27, %28 in 0 : vector<7x4xf32>, vector<1x4xf32> -> vector<8x4xf32>
    %cst_17 = arith.constant dense<0.000000e+00> : vector<8x32xf32>
    %30 = tpu.matmul %26, %1, %cst_17 {dimension_numbers = #tpu.dot_dimension_numbers<[1], [0], [0], [1], [0, 0, 1, 1], [], []>} : vector<8x4xf32>, vector<4x32xf32>, vector<8x32xf32> -> vector<8x32xf32>
    %cst_18 = arith.constant dense<0.000000e+00> : vector<8x32xf32>
    %31 = tpu.matmul %23, %3, %cst_18 {dimension_numbers = #tpu.dot_dimension_numbers<[1], [0], [0], [1], [0, 0, 1, 1], [], []>} : vector<8x4xf32>, vector<4x32xf32>, vector<8x32xf32> -> vector<8x32xf32>
    %32 = arith.addf %30, %31 : vector<8x32xf32>
    %cst_19 = arith.constant dense<0.000000e+00> : vector<8x32xf32>
    %33 = tpu.matmul %29, %5, %cst_19 {dimension_numbers = #tpu.dot_dimension_numbers<[1], [0], [0], [1], [0, 0, 1, 1], [], []>} : vector<8x4xf32>, vector<4x32xf32>, vector<8x32xf32> -> vector<8x32xf32>
    %34 = arith.addf %32, %33 : vector<8x32xf32>
    %c1_20 = arith.constant 1 : index
    %c0_21 = arith.constant 0 : index
    %c0_22 = arith.constant 0 : index
    %35 = vector.load %arg3[%c1_20, %c0_21, %c0_22] : memref<2x8x32xf32, #tpu.memory_space<vmem>>, vector<1x8x32xf32>
    %36 = vector.shape_cast %35 : vector<1x8x32xf32> to vector<8x32xf32>
    %37 = vector.shape_cast %34 : vector<8x32xf32> to vector<1x8x32xf32>
    tpu.vector_store %arg3[%c1_20, %c0_21, %c0_22], %37 {strides = array<i32>} : memref<2x8x32xf32, #tpu.memory_space<vmem>>, vector<1x8x32xf32>,
    return
  }
  func.func @transform_0(%arg0: i32) -> (i32, i32, i32) {
    %c0_i32 = arith.constant 0 : i32
    %c0_i32_0 = arith.constant 0 : i32
    %c0_i32_1 = arith.constant 0 : i32
    return %arg0, %c0_i32, %c0_i32_0 : i32, i32, i32
  }
  func.func @transform_1(%arg0: i32) -> (i32, i32, i32) {
    %c0_i32 = arith.constant 0 : i32
    %c0_i32_0 = arith.constant 0 : i32
    %c0_i32_1 = arith.constant 0 : i32
    %c0_i32_2 = arith.constant 0 : i32
    return %c0_i32, %c0_i32_0, %c0_i32_1 : i32, i32, i32
  }
  func.func @transform_2(%arg0: i32) -> (i32, i32, i32) {
    %c0_i32 = arith.constant 0 : i32
    %c0_i32_0 = arith.constant 0 : i32
    %c0_i32_1 = arith.constant 0 : i32
    return %arg0, %c0_i32, %c0_i32_0 : i32, i32, i32
  }
}

</mosaic_0001>

<bundles_post_ra>
// kernel: tpu_custom_call.1
= control target key start
LH: loop header
LB: loop body
LE: loop exit
PB: predicated region body
PF: predicated region fallthrough
CT: control target
= control target key end

     0   :  { %6 = vsyncpa [#allocation3], 0  ;;  %s129_s0 = inlined_call_operand.hbm [shape: f32[24,128], index: 0, kind: input, shape index: {}]   ;;  %s130_s1 = inlined_call_operand.hbm [shape: f32[24,128], index: 1, kind: output, shape index: {}]  }
   0x1   :  { %7 = vsyncpa [#allocation4], 0  ;;  %s103_s6 = smov [#allocation2]  }
   0x2   :  { %s13_s7 = sshll.u32 %s103_s6, 4  ;;  %s14_s7 = int_to_ptr.vmem [resolvable:$true] %s13_s7 }
   0x3   :  { %s67_s8 = scalar_lea.vmem %s14_s7, 384  ;;  %p72_p1 = scmp.lt.s32.totalorder %s14_s7, %s14_s7 }
   0x4   :  { %p68_p0 = scmp.ne.s32.totalorder %s14_s7, %s67_s8  ;;  %p73_p2 = scmp.lt.s32.totalorder %s67_s8, %s67_s8 }
   0x6   :  { %p74_p3 = por %p73_p2, %p72_p1 }
   0x8   :  { %p75_p4 = pnand %p74_p3, %p68_p0 }
   0xa   :  { %78 = shalt.err (!%p75_p4)
}
   0xb   :  { %s104_s9 = smov 128   ;;  %s105_s10 = smov 8  }
   0xc   :  { %19 = dma.hbm_to_vmem [thread:$0]  %s129_s0, 384, %s14_s7, [#allocation3], %s104_s9, %s104_s9, %s105_s10  }
   0xd   :  { %99 = dma.done.wait [#allocation3], 384  }
   0xe   :  { %100 = vsyncadd [#allocation3], 4294966912  ;;  %v29_v0 = vlaneseq  ;;  %s106_s13 = smov [#allocation5]   ;;  %v23_v2 = vld [vmem:[#allocation2] sm:$0xff]  ;;  %v25_v3 = vld [vmem:[#allocation2 + $0x10] sm:$0xff] }
   0xf   :  { %s43_s14 = sshll.u32 %s106_s13, 4  ;;  %v24_v4 = vld [vmem:[#allocation2 + $0x8] sm:$0xff]  ;;  %v26_v5 = vrot.slane %v23_v2, 7  ;;  %v28_v6 = vrot.slane %v25_v3, 7  ;;  %s44_s14 = int_to_ptr.vmem [resolvable:$true] %s43_s14 }
  0x10   :  { %v30_v1 = vshrl.u32 %v29_v0, 7  ;;  %v27_v7 = vrot.slane %v24_v4, 7  ;;  %s79_s0 = scalar_lea.vmem %s44_s14, 384  ;;  %p84_p6 = scmp.lt.s32.totalorder %s44_s14, %s44_s14 }
  0x11   :  { %p80_p5 = scmp.ne.s32.totalorder %s44_s14, %s79_s0  ;;  %p85_p7 = scmp.lt.s32.totalorder %s79_s0, %s79_s0 }
  0x12   :  { %vm31_vm0 = vcmp.lt.s32.totalorder %v30_v1, 1 }
  0x13   :  { %v34_v8 = vsel %vm31_vm0, %v28_v6, %v26_v5  ;;  %v33_v9 = vsel %vm31_vm0, %v26_v5, %v27_v7  ;;  %v32_v10 = vsel %vm31_vm0, %v27_v7, %v28_v6  ;;  %p86_p8 = por %p85_p7, %p84_p6 }
  0x14   :  { %35 = vst [vmem:[#allocation5] sm:$0xff] %v34_v8  ;;  %36 = vst [vmem:[#allocation5 + $0x8] sm:$0xff] %v33_v9 }
  0x15   :  { %37 = vst [vmem:[#allocation5 + $0x10] sm:$0xff] %v32_v10  ;;  %p87_p9 = pnand %p86_p8, %p80_p5 }
  0x17   :  { %90 = shalt.err (!%p87_p9)
}
  0x18   :  { %49 = dma.vmem_to_hbm [thread:$0]  %s44_s14, 384, %s130_s1, [#allocation4], %s104_s9, %s104_s9, %s105_s10  }
  0x19   :  { %101 = dma.done.wait [#allocation4], 384  }
  0x1a   :  { %102 = vsyncadd [#allocation4], 4294966912 }
  0x1b   :  { %53 = vsyncpa [#allocation3], 1 }
  0x1c   :  { %54 = vsyncpa [#allocation4], 1 }

// kernel: tpu_custom_call.1
= control target key start
LH: loop header
LB: loop body
LE: loop exit
PB: predicated region body
PF: predicated region fallthrough
CT: control target
= control target key end

     0   :  { %vm30_vm0 = vcmask 1043456   ;;  %v589_v2 = vmov 0.0   ;;  %vm590_vm1 = vmmov 0   ;;  %vm27_vm2 = vcmask 31744   ;;  %s645_s0 = inlined_call_operand.vmem [shape: f32[2,8,4], index: 0, kind: input, shape index: {}]   ;;  %s646_s1 = inlined_call_operand.vmem [shape: f32[3,4,32], index: 1, kind: input, shape index: {}]   ;;  %s647_s2 = inlined_call_operand.hbm [shape: f32[2,8,32], index: 2, kind: output, shape index: {}]  }
   0x1   :  { %v505_v0 = vld [vmem:[%s646_s1 + $0x4] sm:$0xf]  ;;  %532 = vmatprep.subr.mxu0 %v589_v2  ;;  %534 = vmatprep.mubr.msk.f32.mxu0 %vm590_vm1, %v589_v2  ;;  %v12_v4 = vld [vmem:[%s646_s1] sm:$0xf]  ;;  %v506_v5 = vld [vmem:[%s646_s1 + $0x8] sm:$0xf] }
   0x2   :  { %v17_v1 = vld [vmem:[%s645_s0] sm:$0xff]  ;;  %533 = vmatpush3.msk.msra.mxu0 %vm30_vm0, %v505_v0  ;;  %537 = vmatprep.subr.mxu1 %v589_v2 }
   0x3   :  { %v19_v3 = vrot.slane %v17_v1, 7 }
   0x4   :  { %7 = vsyncpa [#allocation3], 0  ;;  %v23_v6 = vrot.slane %v17_v1, 1  ;;  %535 = vmatmul.mubr.msk.f32.vlgmr.msra.gmra.mxu0 %vm27_vm2, %v17_v1  ;;  %538 = vmatpush3.msk.msra.mxu1 %vm30_vm0, %v12_v4  ;;  %v513_v7 = vld [vmem:[%s645_s0 + $0x8] sm:$0xff]  ;;  %vm257_vm3 = vcmask 261120   ;;  %s591_s0 = smov [#allocation2]  }
   0x5   :  { %539 = vmatprep.mubr.msk.f32.mxu1 %vm590_vm1, %v589_v2  ;;  %542 = vmatprep.subr.mxu0 %v589_v2  ;;  %v262_v8 = vrot.slane %v513_v7, 7  ;;  %v265_v9 = vrot.slane %v513_v7, 1  ;;  %s494_s1 = sshll.u32 %s591_s0, 4  ;;  %s495_s1 = int_to_ptr.vmem [resolvable:$true] %s494_s1 }
   0x6   :  { %540 = vmatmul.mubr.msk.f32.vlgmr.msra.gmra.mxu1 %vm27_vm2, %v19_v3  ;;  %543 = vmatpush3.msk.msra.mxu0 %vm30_vm0, %v506_v5  ;;  %s567_s19 = scalar_lea.vmem %s495_s1, 256  ;;  %p572_p1 = scmp.lt.s32.totalorder %s495_s1, %s495_s1 }
   0x7   :  { %547 = vmatprep.subr.mxu1 %v589_v2  ;;  %544 = vmatprep.mubr.msk.f32.mxu0 %vm590_vm1, %v589_v2  ;;  %p568_p0 = scmp.ne.s32.totalorder %s495_s1, %s567_s19  ;;  %p573_p2 = scmp.lt.s32.totalorder %s567_s19, %s567_s19 }
   0x8   :  { %548 = vmatpush3.msk.msra.mxu1 %vm30_vm0, %v505_v0  ;;  %545 = vmatmul.mubr.msk.f32.vlgmr.msra.gmra.mxu0 %vm27_vm2, %v23_v6 }
   0x9   :  { %549 = vmatprep.mubr.msk.f32.mxu1 %vm590_vm1, %v589_v2  ;;  %552 = vmatprep.subr.mxu0 %v589_v2  ;;  %p574_p3 = por %p573_p2, %p572_p1 }
   0xa   :  { %550 = vmatmul.mubr.msk.f32.vlgmr.msra.gmra.mxu1 %vm27_vm2, %v513_v7  ;;  %553 = vmatpush3.msk.msra.mxu0 %vm30_vm0, %v12_v4 }
   0xb   :  { %557 = vmatprep.subr.mxu1 %v589_v2  ;;  %554 = vmatprep.mubr.msk.f32.mxu0 %vm590_vm1, %v589_v2  ;;  %p575_p4 = pnand %p574_p3, %p568_p0 }
   0xc   :  { %558 = vmatpush3.msk.msra.mxu1 %vm30_vm0, %v506_v5  ;;  %555 = vmatmul.mubr.msk.f32.vlgmr.msra.gmra.mxu0 %vm27_vm2, %v262_v8 }
   0xd   :  { %559 = vmatprep.mubr.msk.f32.mxu1 %vm590_vm1, %v589_v2 }
   0xe   :  { %560 = vmatmul.mubr.msk.f32.vlgmr.msra.gmra.mxu1 %vm27_vm2, %v265_v9 }
  0xc4   :  { %v100_v10 = vpop.f32.mrf.mxu0 }
  0xc6   :  { %v176_v11 = vpop.f32.mrf.mxu1  ;;  %v536_v12 = vpop.f32.mrf.mxu0 }
  0xc7   :  { %v177_v13 = vadd.f32 %v176_v11, %v100_v10 }
  0xc8   :  { %v541_v14 = vpop.f32.mrf.mxu1  ;;  %v252_v15 = vpop.f32.mrf.mxu0 }
  0xc9   :  { %v256_v16 = vadd.f32 %v252_v15, %v177_v13 }
  0xca   :  { %v336_v17 = vpop.f32.mrf.mxu1  ;;  %v546_v18 = vpop.f32.mrf.mxu0 }
  0xcb   :  { %258 = vst.msk [vmem:[#allocation2] sm:$0xff] %vm257_vm3, %v256_v16 }
  0xcc   :  { %v551_v19 = vpop.f32.mrf.mxu1  ;;  %v409_v20 = vpop.f32.mrf.mxu0 }
  0xcd   :  { %v410_v21 = vadd.f32 %v409_v20, %v336_v17 }
  0xce   :  { %v482_v22 = vpop.f32.mrf.mxu1  ;;  %v556_v23 = vpop.f32.mrf.mxu0 }
  0xcf   :  { %v486_v24 = vadd.f32 %v482_v22, %v410_v21 }
  0xd0   :  { %v561_v25 = vpop.f32.mrf.mxu1 }
  0xd1   :  { %488 = vst.msk [vmem:[#allocation2 + $0x8] sm:$0xff] %vm257_vm3, %v486_v24 }
  0xd2   :  { %578 = shalt.err (!%p575_p4)
}
  0xd3   :  { %s592_s20 = smov 128   ;;  %s593_s21 = smov 8  }
  0xd4   :  { %500 = dma.vmem_to_hbm [thread:$0]  %s495_s1, 256, %s647_s2, [#allocation3], %s592_s20, %s592_s20, %s593_s21  }
  0xd5   :  { %587 = dma.done.wait [#allocation3], 256  }
  0xd6   :  { %588 = vsyncadd [#allocation3], 4294967040 }
  0xd7   :  { %504 = vsyncpa [#allocation3], 1 }

</bundles_post_ra>
